<compile_context>
chip_gen: v7x
topology: tpu7x:2x2x1
jax: 0.10.0
libtpu: 0.0.40
codegen_flags: <defaults>
</compile_context>

<pallas_src>
import functools

import jax
import jax.numpy as jnp
from jax import lax
from jax.experimental import pallas as pl
from jax.experimental.pallas import tpu as pltpu

ALPHA = 0.25
BETA = 0.75
GAMMA = 2.0
SMOOTH = 1.0

_LANES = 128
_ROW_PACK = 8                 # f32 sublane packing -> rows padded to mult of 8
_MAX_TILE_ROWS = 2048         # (2048,128) f32 tile = 1 MiB per input per step


def _stats_kernel(x_ref, t_ref, stat_ref, *, gamma, steps, tile_rows,
                  valid_rows, needs_mask):
    """Accumulates vector partials of (TP, sum(p), sum(t), sum(focal))."""
    s = pl.program_id(1)

    @pl.when(s == 0)
    def _():
        stat_ref[...] = jnp.zeros_like(stat_ref)

    x = x_ref[...].astype(jnp.float32)
    t = t_ref[...].astype(jnp.float32)

    if needs_mask:
        # Rows past the end of the array (partial last tile, or fully
        # duplicated surplus tiles on the parallel split) contribute exactly
        # zero once forced to (x=-1e9, t=0).
        tile_idx = pl.program_id(0) * steps + s          # un-clamped tile index
        limit = valid_rows - tile_idx * tile_rows        # #valid rows here
        row_ids = lax.broadcasted_iota(jnp.int32, x.shape, 0)
        mask = row_ids < limit
        x = jnp.where(mask, x, -1e9)
        t = jnp.where(mask, t, 0.0)

    # Shared transcendental: e = exp(-|x|) feeds both sigmoid and stable BCE.
    e = jnp.exp(-jnp.abs(x))
    denom = 1.0 + e
    inv = pl.reciprocal(denom, approx=True)
    inv = inv * (2.0 - denom * inv)           # one Newton step -> ~f32 accuracy
    p = jnp.where(x >= 0.0, inv, e * inv)     # sigmoid(x)

    # Numerically stable BCE-with-logits: max(x,0) - x*t + log1p(exp(-|x|)).
    bce = jnp.maximum(x, 0.0) - x * t + jnp.log1p(e)

    pt_prod = p * t                           # reused for TP and for pt
    one_m_pt = p + t - 2.0 * pt_prod          # = 1 - (p*t + (1-p)*(1-t))
    if float(gamma) == float(int(gamma)) and gamma >= 0:
        g = int(gamma)
        if g == 0:
            mod = jnp.ones_like(one_m_pt)
        else:
            mod = one_m_pt
            for _ in range(g - 1):            # gamma=2 -> one extra VPU multiply
                mod = mod * one_m_pt
    else:
        mod = jnp.power(one_m_pt, gamma)      # generic fallback
    focal = mod * bce

    rows = x.shape[0]

    def partial_sum(v):                       # (rows,128) -> (8,128), VPU adds
        return v.reshape(rows // 8, 8, _LANES).sum(axis=0)

    stat_ref[0, 0, :, :] += partial_sum(pt_prod)  # TP
    stat_ref[0, 1, :, :] += partial_sum(p)        # sum(p): FP = sum(p) - TP
    stat_ref[0, 2, :, :] += partial_sum(t)        # sum(t): FN = sum(t) - TP
    stat_ref[0, 3, :, :] += partial_sum(focal)    # focal numerator


def hybrid_loss(logits, targets, *, alpha=ALPHA, beta=BETA, gamma=GAMMA,
                smooth=SMOOTH):
    """logits/targets: arrays of identical shape (e.g. NCHW)."""
    assert logits.shape == targets.shape
    n = int(logits.size)

    if targets.dtype == jnp.bool_:
        targets = targets.astype(jnp.float32)

    # --- lane-dense layout; pad only when unavoidable (n % 1024 != 0) -------
    chunk = _ROW_PACK * _LANES                # 1024 elements
    padded = -(-n // chunk) * chunk
    x_flat = logits.reshape(-1)
    t_flat = targets.reshape(-1)
    if padded != n:                           # rare path; pad contributes 0
        pad = padded - n
        x_flat = jnp.concatenate(
            [x_flat.astype(jnp.float32), jnp.full((pad,), -1e9, jnp.float32)])
        t_flat = jnp.concatenate(
            [t_flat.astype(jnp.float32), jnp.zeros((pad,), jnp.float32)])

    rows = padded // _LANES                   # multiple of 8
    x2 = x_flat.reshape(rows, _LANES)         # free reshape (no copy)
    t2 = t_flat.reshape(rows, _LANES)

    tile_rows = min(_MAX_TILE_ROWS, rows)
    tiles = -(-rows // tile_rows)
    num_par = 2 if tiles >= 2 else 1          # v7x: one slice per TensorCore
    steps = -(-tiles // num_par)
    needs_mask = (num_par * steps * tile_rows) != rows

    kernel = functools.partial(
        _stats_kernel, gamma=float(gamma), steps=steps, tile_rows=tile_rows,
        valid_rows=rows, needs_mask=needs_mask)

    def in_map(p, s):
        # Clamp surplus tiles (odd tile counts on the 2-way split) onto the
        # last real tile; the kernel masks them to zero contribution.
        return (jnp.minimum(p * steps + s, tiles - 1), 0)

    stats = pl.pallas_call(
        kernel,
        out_shape=jax.ShapeDtypeStruct((num_par, 4, 8, _LANES), jnp.float32),
        grid_spec=pltpu.PrefetchScalarGridSpec(
            num_scalar_prefetch=0,
            grid=(num_par, steps),
            in_specs=[
                pl.BlockSpec((tile_rows, _LANES), in_map),
                pl.BlockSpec((tile_rows, _LANES), in_map),
            ],
            out_specs=pl.BlockSpec((1, 4, 8, _LANES),
                                   lambda p, s: (p, 0, 0, 0)),
        ),
        compiler_params=pltpu.CompilerParams(
            dimension_semantics=("parallel", "arbitrary"),
            vmem_limit_bytes=32 * 1024 * 1024),
    )(x2, t2)

    # --- tiny finalize in plain JAX -----------------------------------------
    sums = jnp.sum(stats, axis=(0, 2, 3))     # (4,)
    tp, sum_p, sum_t, focal_sum = sums[0], sums[1], sums[2], sums[3]
    fp = sum_p - tp
    fn = sum_t - tp
    tversky = 1.0 - (tp + smooth) / (tp + alpha * fp + beta * fn + smooth)
    focal_mean = focal_sum / float(n)
    return tversky + focal_mean


def _reference_loss(logits, targets, *, alpha=ALPHA, beta=BETA, gamma=GAMMA,
                    smooth=SMOOTH):
    x = logits.astype(jnp.float32)
    t = targets.astype(jnp.float32)
    p = jax.nn.sigmoid(x)
    tp = jnp.sum(p * t)
    fp = jnp.sum(p * (1.0 - t))
    fn = jnp.sum((1.0 - p) * t)
    tversky = 1.0 - (tp + smooth) / (tp + alpha * fp + beta * fn + smooth)
    bce = jnp.maximum(x, 0.0) - x * t + jnp.log1p(jnp.exp(-jnp.abs(x)))
    pt = p * t + (1.0 - p) * (1.0 - t)
    focal = jnp.mean(jnp.power(1.0 - pt, gamma) * bce)
    return tversky + focal


if __name__ == "__main__":
    key = jax.random.PRNGKey(0)
    loss_fn = jax.jit(hybrid_loss)

    test_shapes = [
        (2, 4, 16, 16),     # base NCHW segmentation-style input (zero-copy)
        (2, 3, 17, 19),     # odd element count -> exercises the padding path
        (2, 4, 256, 256),   # two full tiles -> parallel split, no masking
        (2, 4, 192, 256),   # partial last tile -> in-kernel row masking
        (3, 4, 256, 256),   # odd tile count -> clamped duplicate tile + mask
    ]
    for shape in test_shapes:
        key, k1, k2 = jax.random.split(key, 3)
        logits = jax.random.normal(k1, shape, dtype=jnp.float32)
        targets = (jax.random.uniform(k2, shape) > 0.5).astype(jnp.float32)

        loss = jax.block_until_ready(loss_fn(logits, targets))
        ref = jax.block_until_ready(_reference_loss(logits, targets))
        assert jnp.allclose(loss, ref, rtol=5e-5, atol=5e-5), (
            shape, float(loss), float(ref))

    print("KERNEL_OK")
</pallas_src>

<mosaic_0001>
module attributes {stable_mosaic.version = 11 : i64} {
  func.func @_stats_kernel(%arg0: i32, %arg1: i32, %arg2: memref<16x128xf32, #tpu.memory_space<vmem>>, %arg3: memref<16x128xf32, #tpu.memory_space<vmem>>, %arg4: memref<1x4x8x128xf32, #tpu.memory_space<vmem>>) attributes {dimension_semantics = [#tpu.dimension_semantics<parallel>, #tpu.dimension_semantics<arbitrary>], iteration_bounds = array<i64: 1, 1>, scalar_prefetch = 0 : i64, scratch_operands = 0 : i64, tpu.core_type = #tpu.core_type<tc>, window_params = [{transform_indices = @transform_0, window_bounds = array<i64: 16, 128>}, {transform_indices = @transform_1, window_bounds = array<i64: 16, 128>}, {transform_indices = @transform_2, window_bounds = array<i64: 1, 4, 8, 128>}]} {
    %c0_i32 = arith.constant 0 : i32
    %0 = arith.cmpi eq, %arg1, %c0_i32 : i32
    %1 = arith.extui %0 : i1 to i32
    %c0_i32_0 = arith.constant 0 : i32
    %2 = arith.cmpi ne, %1, %c0_i32_0 : i32
    scf.if %2 {
      %cst_42 = arith.constant 0.000000e+00 : f32
      %65 = vector.broadcast %cst_42 : f32 to vector<1x4x8x128xf32>
      %c0_43 = arith.constant 0 : index
      %c0_44 = arith.constant 0 : index
      %c0_45 = arith.constant 0 : index
      %c0_46 = arith.constant 0 : index
      %66 = vector.load %arg4[%c0_43, %c0_44, %c0_45, %c0_46] : memref<1x4x8x128xf32, #tpu.memory_space<vmem>>, vector<1x4x8x128xf32>
      tpu.vector_store %arg4[%c0_43, %c0_44, %c0_45, %c0_46], %65 {strides = array<i32>} : memref<1x4x8x128xf32, #tpu.memory_space<vmem>>, vector<1x4x8x128xf32>,
    } else {
    }
    %c0 = arith.constant 0 : index
    %c0_1 = arith.constant 0 : index
    %3 = vector.load %arg2[%c0, %c0_1] : memref<16x128xf32, #tpu.memory_space<vmem>>, vector<16x128xf32>
    %c0_2 = arith.constant 0 : index
    %c0_3 = arith.constant 0 : index
    %4 = vector.load %arg3[%c0_2, %c0_3] : memref<16x128xf32, #tpu.memory_space<vmem>>, vector<16x128xf32>
    %5 = math.absf %3 : vector<16x128xf32>
    %cst = arith.constant 0.000000e+00 : f32
    %6 = vector.broadcast %cst : f32 to vector<16x128xf32>
    %7 = arith.subf %6, %5 : vector<16x128xf32>
    %8 = math.exp %7 : vector<16x128xf32>
    %cst_4 = arith.constant 1.000000e+00 : f32
    %9 = vector.broadcast %cst_4 : f32 to vector<16x128xf32>
    %10 = arith.addf %9, %8 : vector<16x128xf32>
    %11 = tpu.reciprocal %10 {approx = true} : vector<16x128xf32> -> vector<16x128xf32>
    %12 = arith.mulf %10, %11 : vector<16x128xf32>
    %cst_5 = arith.constant 2.000000e+00 : f32
    %13 = vector.broadcast %cst_5 : f32 to vector<16x128xf32>
    %14 = arith.subf %13, %12 : vector<16x128xf32>
    %15 = arith.mulf %11, %14 : vector<16x128xf32>
    %cst_6 = arith.constant 0.000000e+00 : f32
    %16 = vector.broadcast %cst_6 : f32 to vector<16x128xf32>
    %17 = arith.cmpf oge, %3, %16 : vector<16x128xf32>
    %18 = arith.mulf %8, %15 : vector<16x128xf32>
    %19 = arith.select %17, %15, %18 : vector<16x128xi1>, vector<16x128xf32>
    %cst_7 = arith.constant 0.000000e+00 : f32
    %20 = vector.broadcast %cst_7 : f32 to vector<16x128xf32>
    %21 = arith.maximumf %3, %20 : vector<16x128xf32>
    %22 = arith.mulf %3, %4 : vector<16x128xf32>
    %23 = arith.subf %21, %22 : vector<16x128xf32>
    %24 = math.log1p %8 : vector<16x128xf32>
    %25 = arith.addf %23, %24 : vector<16x128xf32>
    %26 = arith.mulf %19, %4 : vector<16x128xf32>
    %27 = arith.addf %19, %4 : vector<16x128xf32>
    %cst_8 = arith.constant 2.000000e+00 : f32
    %28 = vector.broadcast %cst_8 : f32 to vector<16x128xf32>
    %29 = arith.mulf %28, %26 : vector<16x128xf32>
    %30 = arith.subf %27, %29 : vector<16x128xf32>
    %31 = arith.mulf %30, %30 : vector<16x128xf32>
    %32 = arith.mulf %31, %25 : vector<16x128xf32>
    %c0_9 = arith.constant 0 : index
    %c0_10 = arith.constant 0 : index
    %c0_11 = arith.constant 0 : index
    %c0_12 = arith.constant 0 : index
    %33 = vector.load %arg4[%c0_9, %c0_10, %c0_11, %c0_12] : memref<1x4x8x128xf32, #tpu.memory_space<vmem>>, vector<1x1x8x128xf32>
    %34 = vector.shape_cast %33 : vector<1x1x8x128xf32> to vector<8x128xf32>
    %35 = vector.shape_cast %26 : vector<16x128xf32> to vector<2x8x128xf32>
    %cst_13 = arith.constant dense<0.000000e+00> : vector<8x128xf32>
    %36 = vector.multi_reduction <add>, %35, %cst_13 [0] : vector<2x8x128xf32> to vector<8x128xf32>
    %37 = arith.addf %34, %36 : vector<8x128xf32>
    %c0_14 = arith.constant 0 : index
    %c0_15 = arith.constant 0 : index
    %c0_16 = arith.constant 0 : index
    %c0_17 = arith.constant 0 : index
    %38 = vector.load %arg4[%c0_14, %c0_15, %c0_16, %c0_17] : memref<1x4x8x128xf32, #tpu.memory_space<vmem>>, vector<1x1x8x128xf32>
    %39 = vector.shape_cast %38 : vector<1x1x8x128xf32> to vector<8x128xf32>
    %40 = vector.shape_cast %37 : vector<8x128xf32> to vector<1x1x8x128xf32>
    tpu.vector_store %arg4[%c0_14, %c0_15, %c0_16, %c0_17], %40 {strides = array<i32>} : memref<1x4x8x128xf32, #tpu.memory_space<vmem>>, vector<1x1x8x128xf32>,
    %c0_18 = arith.constant 0 : index
    %c1 = arith.constant 1 : index
    %c0_19 = arith.constant 0 : index
    %c0_20 = arith.constant 0 : index
    %41 = vector.load %arg4[%c0_18, %c1, %c0_19, %c0_20] : memref<1x4x8x128xf32, #tpu.memory_space<vmem>>, vector<1x1x8x128xf32>
    %42 = vector.shape_cast %41 : vector<1x1x8x128xf32> to vector<8x128xf32>
    %43 = vector.shape_cast %19 : vector<16x128xf32> to vector<2x8x128xf32>
    %cst_21 = arith.constant dense<0.000000e+00> : vector<8x128xf32>
    %44 = vector.multi_reduction <add>, %43, %cst_21 [0] : vector<2x8x128xf32> to vector<8x128xf32>
    %45 = arith.addf %42, %44 : vector<8x128xf32>
    %c0_22 = arith.constant 0 : index
    %c1_23 = arith.constant 1 : index
    %c0_24 = arith.constant 0 : index
    %c0_25 = arith.constant 0 : index
    %46 = vector.load %arg4[%c0_22, %c1_23, %c0_24, %c0_25] : memref<1x4x8x128xf32, #tpu.memory_space<vmem>>, vector<1x1x8x128xf32>
    %47 = vector.shape_cast %46 : vector<1x1x8x128xf32> to vector<8x128xf32>
    %48 = vector.shape_cast %45 : vector<8x128xf32> to vector<1x1x8x128xf32>
    tpu.vector_store %arg4[%c0_22, %c1_23, %c0_24, %c0_25], %48 {strides = array<i32>} : memref<1x4x8x128xf32, #tpu.memory_space<vmem>>, vector<1x1x8x128xf32>,
    %c0_26 = arith.constant 0 : index
    %c2 = arith.constant 2 : index
    %c0_27 = arith.constant 0 : index
    %c0_28 = arith.constant 0 : index
    %49 = vector.load %arg4[%c0_26, %c2, %c0_27, %c0_28] : memref<1x4x8x128xf32, #tpu.memory_space<vmem>>, vector<1x1x8x128xf32>
    %50 = vector.shape_cast %49 : vector<1x1x8x128xf32> to vector<8x128xf32>
    %51 = vector.shape_cast %4 : vector<16x128xf32> to vector<2x8x128xf32>
    %cst_29 = arith.constant dense<0.000000e+00> : vector<8x128xf32>
    %52 = vector.multi_reduction <add>, %51, %cst_29 [0] : vector<2x8x128xf32> to vector<8x128xf32>
    %53 = arith.addf %50, %52 : vector<8x128xf32>
    %c0_30 = arith.constant 0 : index
    %c2_31 = arith.constant 2 : index
    %c0_32 = arith.constant 0 : index
    %c0_33 = arith.constant 0 : index
    %54 = vector.load %arg4[%c0_30, %c2_31, %c0_32, %c0_33] : memref<1x4x8x128xf32, #tpu.memory_space<vmem>>, vector<1x1x8x128xf32>
    %55 = vector.shape_cast %54 : vector<1x1x8x128xf32> to vector<8x128xf32>
    %56 = vector.shape_cast %53 : vector<8x128xf32> to vector<1x1x8x128xf32>
    tpu.vector_store %arg4[%c0_30, %c2_31, %c0_32, %c0_33], %56 {strides = array<i32>} : memref<1x4x8x128xf32, #tpu.memory_space<vmem>>, vector<1x1x8x128xf32>,
    %c0_34 = arith.constant 0 : index
    %c3 = arith.constant 3 : index
    %c0_35 = arith.constant 0 : index
    %c0_36 = arith.constant 0 : index
    %57 = vector.load %arg4[%c0_34, %c3, %c0_35, %c0_36] : memref<1x4x8x128xf32, #tpu.memory_space<vmem>>, vector<1x1x8x128xf32>
    %58 = vector.shape_cast %57 : vector<1x1x8x128xf32> to vector<8x128xf32>
    %59 = vector.shape_cast %32 : vector<16x128xf32> to vector<2x8x128xf32>
    %cst_37 = arith.constant dense<0.000000e+00> : vector<8x128xf32>
    %60 = vector.multi_reduction <add>, %59, %cst_37 [0] : vector<2x8x128xf32> to vector<8x128xf32>
    %61 = arith.addf %58, %60 : vector<8x128xf32>
    %c0_38 = arith.constant 0 : index
    %c3_39 = arith.constant 3 : index
    %c0_40 = arith.constant 0 : index
    %c0_41 = arith.constant 0 : index
    %62 = vector.load %arg4[%c0_38, %c3_39, %c0_40, %c0_41] : memref<1x4x8x128xf32, #tpu.memory_space<vmem>>, vector<1x1x8x128xf32>
    %63 = vector.shape_cast %62 : vector<1x1x8x128xf32> to vector<8x128xf32>
    %64 = vector.shape_cast %61 : vector<8x128xf32> to vector<1x1x8x128xf32>
    tpu.vector_store %arg4[%c0_38, %c3_39, %c0_40, %c0_41], %64 {strides = array<i32>} : memref<1x4x8x128xf32, #tpu.memory_space<vmem>>, vector<1x1x8x128xf32>,
    return
  }
  func.func @transform_0(%arg0: i32, %arg1: i32) -> (i32, i32) {
    %c1_i32 = arith.constant 1 : i32
    %0 = arith.muli %arg0, %c1_i32 : i32
    %1 = arith.addi %0, %arg1 : i32
    %c0_i32 = arith.constant 0 : i32
    %2 = arith.minsi %1, %c0_i32 : i32
    %c0_i32_0 = arith.constant 0 : i32
    %c0_i32_1 = arith.constant 0 : i32
    return %2, %c0_i32_0 : i32, i32
  }
  func.func @transform_1(%arg0: i32, %arg1: i32) -> (i32, i32) {
    %c1_i32 = arith.constant 1 : i32
    %0 = arith.muli %arg0, %c1_i32 : i32
    %1 = arith.addi %0, %arg1 : i32
    %c0_i32 = arith.constant 0 : i32
    %2 = arith.minsi %1, %c0_i32 : i32
    %c0_i32_0 = arith.constant 0 : i32
    %c0_i32_1 = arith.constant 0 : i32
    return %2, %c0_i32_0 : i32, i32
  }
  func.func @transform_2(%arg0: i32, %arg1: i32) -> (i32, i32, i32, i32) {
    %c0_i32 = arith.constant 0 : i32
    %c0_i32_0 = arith.constant 0 : i32
    %c0_i32_1 = arith.constant 0 : i32
    %c0_i32_2 = arith.constant 0 : i32
    return %arg0, %c0_i32, %c0_i32_0, %c0_i32_1 : i32, i32, i32, i32
  }
}

</mosaic_0001>

<bundles_post_ra>
// kernel: hybrid_loss.1
= control target key start
LH: loop header
LB: loop body
LE: loop exit
PB: predicated region body
PF: predicated region fallthrough
CT: control target
= control target key end

     0   :  { %s254_s0 = inlined_call_operand.vmem [shape: f32[16,128], index: 0, kind: input, shape index: {}]   ;;  %s255_s1 = inlined_call_operand.vmem [shape: f32[16,128], index: 1, kind: input, shape index: {}]   ;;  %s256_s2 = inlined_call_operand.vmem [shape: f32[1,4,8,128], index: 2, kind: output, shape index: {}]  }
   0x1   :  { %v83_v0 = vld [vmem:[%s254_s0] sm:$0xff]  ;;  %v84_v1 = vld [vmem:[%s254_s0 + $0x8] sm:$0xff] }
   0x2   :  { %v85_v2 = vld [vmem:[%s255_s1] sm:$0xff]  ;;  %v86_v3 = vld [vmem:[%s255_s1 + $0x8] sm:$0xff]  ;;  %v87_v4 = vand.u32 2147483647, %v83_v0  ;;  %v88_v5 = vand.u32 2147483647, %v84_v1 }
   0x3   :  { %v160_v6 = vadd.f32 %v86_v3, %v85_v2  ;;  %v111_v29 = vmax.f32 %v83_v0, 0.0  ;;  %v113_v30 = vmul.f32 %v85_v2, %v83_v0  ;;  %vm105_vm0 = vcmp.ge.f32.partialorder %v83_v0, 0.0 }
   0x4   :  { %v89_v7 = vsub.f32 0.0, %v87_v4  ;;  %v90_v8 = vsub.f32 0.0, %v88_v5  ;;  %v112_v33 = vmax.f32 %v84_v1, 0.0  ;;  %v114_v34 = vmul.f32 %v86_v3, %v84_v1 }
   0x5   :  { %187 = vst [vmem:[%s256_s2 + $0x10] sm:$0xff] %v160_v6  ;;  %vm106_vm1 = vcmp.ge.f32.partialorder %v84_v1, 0.0  ;;  %v115_v43 = vsub.f32 %v111_v29, %v113_v30 }
   0x6   :  { %v91_v9 = vmul.f32 1.442695, %v89_v7  ;;  %v93_v10 = vmul.f32 1.442695, %v90_v8  ;;  %v116_v47 = vsub.f32 %v112_v33, %v114_v34 }
   0x8   :  { %191 = vpow2.f32 %v91_v9 }
   0x9   :  { %193 = vpow2.f32 %v93_v10 }
  0x12   :  { %v192_v11 = vpop.eup %191 }
  0x13   :  { %v194_v12 = vpop.eup %193  ;;  %v95_v13 = vadd.f32 1.0, %v192_v11  ;;  %v120_v15 = vmul.f32 -0.5, %v192_v11  ;;  %v123_v25 = vand.u32 2147483647, %v192_v11 }
  0x14   :  { %v96_v14 = vadd.f32 1.0, %v194_v12  ;;  %v129_v17 = vmul.f32 -0.5, %v194_v12  ;;  %v132_v31 = vand.u32 2147483647, %v194_v12 }
  0x15   :  { %195 = vrcp.f32 %v95_v13  ;;  %v121_v22 = vadd.f32 1.0, %v120_v15  ;;  %vm233_vm2 = vcmp.lt.f32.partialorder %v123_v25, 0.0004427343 }
  0x16   :  { %197 = vrcp.f32 %v96_v14  ;;  %v130_v26 = vadd.f32 1.0, %v129_v17  ;;  %vm237_vm3 = vcmp.lt.f32.partialorder %v132_v31, 0.0004427343 }
  0x17   :  { %199 = vlog2.f32 %v95_v13  ;;  %v122_v37 = vmul.f32 %v192_v11, %v121_v22 }
  0x18   :  { %201 = vlog2.f32 %v96_v14  ;;  %v131_v41 = vmul.f32 %v194_v12, %v130_v26 }
  0x1f   :  { %v196_v16 = vpop.eup %195 }
  0x20   :  { %v198_v18 = vpop.eup %197  ;;  %v99_v19 = vmul.f32 %v196_v16, %v95_v13 }
  0x21   :  { %v100_v20 = vmul.f32 %v198_v18, %v96_v14  ;;  %v200_v23 = vpop.eup %199 }
  0x22   :  { %v101_v21 = vsub.f32 2.0, %v99_v19  ;;  %v202_v27 = vpop.eup %201  ;;  %v119_v36 = vmul.f32 0.6931472, %v200_v23 }
  0x23   :  { %v102_v24 = vsub.f32 2.0, %v100_v20  ;;  %v128_v40 = vmul.f32 0.6931472, %v202_v27 }
  0x24   :  { %v103_v28 = vmul.f32 %v196_v16, %v101_v21  ;;  %v125_v51 = vsel %vm233_vm2, %v122_v37, %v119_v36 }
  0x25   :  { %v104_v32 = vmul.f32 %v198_v18, %v102_v24  ;;  %v134_v54 = vsel %vm237_vm3, %v131_v41, %v128_v40  ;;  %v135_v57 = vadd.f32 %v125_v51, %v115_v43 }
  0x26   :  { %v107_v35 = vmul.f32 %v192_v11, %v103_v28  ;;  %v136_v59 = vadd.f32 %v134_v54, %v116_v47 }
  0x27   :  { %v108_v38 = vmul.f32 %v194_v12, %v104_v32 }
  0x28   :  { %v109_v42 = vsel %vm105_vm0, %v103_v28, %v107_v35 }
  0x29   :  { %v110_v45 = vsel %vm106_vm1, %v104_v32, %v108_v38  ;;  %v137_v46 = vmul.f32 %v109_v42, %v85_v2  ;;  %v139_v48 = vadd.f32 %v109_v42, %v85_v2 }
  0x2a   :  { %v138_v49 = vmul.f32 %v110_v45, %v86_v3  ;;  %v155_v50 = vadd.f32 %v110_v45, %v109_v42  ;;  %v140_v52 = vadd.f32 %v110_v45, %v86_v3 }
  0x2b   :  { %v141_v53 = vmul.f32 2.0, %v137_v46 }
  0x2c   :  { %v142_v55 = vmul.f32 2.0, %v138_v49  ;;  %v150_v56 = vadd.f32 %v138_v49, %v137_v46  ;;  %185 = vst [vmem:[%s256_s2 + $0x8] sm:$0xff] %v155_v50 }
  0x2d   :  { %v143_v58 = vsub.f32 %v139_v48, %v141_v53 }
  0x2e   :  { %v144_v60 = vsub.f32 %v140_v52, %v142_v55  ;;  %152 = vst [vmem:[%s256_s2] sm:$0xff] %v150_v56 }
  0x2f   :  { %v145_v61 = vmul.f32 %v143_v58, %v143_v58 }
  0x30   :  { %v146_v62 = vmul.f32 %v144_v60, %v144_v60 }
  0x31   :  { %v147_v63 = vmul.f32 %v145_v61, %v135_v57 }
  0x32   :  { %v148_v0 = vmul.f32 %v146_v62, %v136_v59 }
  0x34   :  { %v165_v1 = vadd.f32 %v148_v0, %v147_v63 }
  0x36   :  { %189 = vst [vmem:[%s256_s2 + $0x18] sm:$0xff] %v165_v1 }

</bundles_post_ra>
